<compile_context>
chip_gen: v6e
topology: v6e:2x2x1
jax: 0.10.0
libtpu: 0.0.40
codegen_flags: <defaults>
</compile_context>

<pallas_src>
import functools
import numpy as np
import jax
import jax.numpy as jnp
from jax import lax
from jax.experimental import pallas as pl
from jax.experimental.pallas import tpu as pltpu


def _intra_attention_kernel(
    lens_ref,    # SMEM scalar-prefetch: (B_pad,) int32 sequence lengths
    q_ref,       # (block_b, T, E) query block
    mw_ref,      # (E, E)  M weight, pre-transposed (proj = q @ mw)
    mb_ref,      # (1, E)  M bias
    w4_ref,      # (4, E)  rows: [Wc[:, :E], Wc[:, E:], Wm, Ws]
    bias_ref,    # (1, 4)  [bc, bm, bs, 0]
    o_ref,       # (block_b, 3, T) lane-dense output (rows: fcc, fcm, fcs)
    *,
    block_b,
):
    b0 = pl.program_id(0) * block_b

    # Weights stay resident; hoist all broadcast sources out of the sub-batch loop.
    mw = mw_ref[...]
    mb = mb_ref[...]
    wcs = w4_ref[0:1, :]          # fcc weight half applied to summary
    wcq = w4_ref[1:2, :]          # fcc weight half applied to query
    wm = w4_ref[2:3, :]           # fcm weight
    ws = w4_ref[3:4, :]           # fcs weight
    bc = bias_ref[0:1, 0:1]
    bm = bias_ref[0:1, 1:2]
    bs = bias_ref[0:1, 2:3]

    # Unrolled sub-batch loop: amortizes per-grid-step overhead; all dots are 2-D.
    for i in range(block_b):
        q = q_ref[i]                                                     # (T, E)

        # projection M(query)
        proj = jnp.dot(q, mw, preferred_element_type=jnp.float32) + mb   # (T, E)

        # Transposed affinity: a[j, k] = <q[j], M(q)[k]> == affinity[k, j], so the
        # mask / softmax axis is the LAST (lane) axis.
        a = lax.dot_general(q, proj, (((1,), (1,)), ((), ())),
                            preferred_element_type=jnp.float32)          # (T, T)

        # Length mask (original masks rows i >= len; after the transpose that is the
        # k / lane axis).  len == 0 gives NaN, same as the reference module.
        k_idx = lax.broadcasted_iota(jnp.int32, a.shape, 1)
        a = jnp.where(k_idx < lens_ref[b0 + i], a, -jnp.inf)

        # softmax along lanes; normalization deferred past the summary matmul so we
        # scale (T, E) elements instead of (T, T).
        m = jnp.max(a, axis=-1, keepdims=True)                           # (T, 1)
        p = jnp.exp(a - m)
        l = jnp.sum(p, axis=-1, keepdims=True)                           # (T, 1)

        summary = jnp.dot(p, q, preferred_element_type=jnp.float32)      # (T, E)
        summary = summary * pl.reciprocal(l, approx=False)

        # Rank-1 heads on the VPU (broadcast-multiply + lane-sum) instead of five
        # N=1 MXU matmuls.
        c = jnp.maximum(
            jnp.sum(summary * wcs + q * wcq, axis=-1)[None, :] + bc, 0.0)        # (1, T)
        mo = jnp.maximum(jnp.sum(summary * q * wm, axis=-1)[None, :] + bm, 0.0)  # (1, T)
        so = jnp.maximum(jnp.sum((summary - q) * ws, axis=-1)[None, :] + bs, 0.0)

        # Lane-dense stores: T sits on the 128-wide lane axis.
        o_ref[i, 0:1, :] = c
        o_ref[i, 1:2, :] = mo
        o_ref[i, 2:3, :] = so


def intra_attention_pallas(query, query_lens, params, *, block_b=None):
    """IntraAttention forward pass. Returns (B, T, 3) float32 (module layout)."""
    B, T, E = query.shape
    query = query.astype(jnp.float32)
    lens = jnp.asarray(query_lens, dtype=jnp.int32)

    # Sub-batch size: batch several sequences per grid step to amortize per-step
    # overhead, but keep >= 2 grid steps when possible so both v7x TensorCores
    # (megacore on v5e/v6e) get parallel work.
    if block_b is None:
        block_b = 1 if B <= 1 else int(min(8, pl.cdiv(B, 2)))
    n_blocks = int(pl.cdiv(B, block_b))
    b_pad = n_blocks * block_b
    if b_pad != B:
        query = jnp.pad(query, ((0, b_pad - B), (0, 0), (0, 0)))
        lens = jnp.pad(lens, (0, b_pad - B), constant_values=1)  # avoid all-masked NaN rows

    # Pre-packed parameters.
    mw_t = params["Mw"].T.astype(jnp.float32)                       # (E, E): proj = q @ mw_t
    mb = params["Mb"].reshape(1, E).astype(jnp.float32)
    w4 = jnp.concatenate(
        [params["Wc"][:, :E], params["Wc"][:, E:], params["Wm"], params["Ws"]],
        axis=0).astype(jnp.float32)                                 # (4, E)
    bias = jnp.concatenate(
        [params["bc"], params["bm"], params["bs"], jnp.zeros((1,), jnp.float32)]
    ).reshape(1, 4).astype(jnp.float32)

    # Scoped-VMEM bound (defaults 16/32 MiB): raise it only when the working set is
    # large; stay below v7x's 64 MiB physical VMEM.
    vmem_needed = 4 * (
        2 * block_b * T * E + 2 * block_b * 3 * T                   # double-buffered I/O blocks
        + E * E + 6 * E + 8                                         # resident weights
        + block_b * (2 * T * T + 3 * T * E))                        # live intermediates
    compiler_kwargs = {}
    if vmem_needed > 24 * 1024 * 1024:
        compiler_kwargs["vmem_limit_bytes"] = int(min(60 * 1024 * 1024, 2 * vmem_needed))
    # TODO(synk): for very large T, tile the key axis flash-style (online max/sum)
    # instead of materializing the full (T, T) affinity in VMEM.

    kernel = functools.partial(_intra_attention_kernel, block_b=block_b)
    out = pl.pallas_call(
        kernel,
        out_shape=jax.ShapeDtypeStruct((b_pad, 3, T), jnp.float32),
        grid_spec=pltpu.PrefetchScalarGridSpec(
            num_scalar_prefetch=1,
            grid=(n_blocks,),
            in_specs=[
                pl.BlockSpec((block_b, T, E), lambda b, _: (b, 0, 0)),  # query
                pl.BlockSpec((E, E), lambda b, _: (0, 0)),              # Mw^T
                pl.BlockSpec((1, E), lambda b, _: (0, 0)),              # Mb
                pl.BlockSpec((4, E), lambda b, _: (0, 0)),              # packed fc weights
                pl.BlockSpec((1, 4), lambda b, _: (0, 0)),              # packed fc biases
            ],
            out_specs=pl.BlockSpec((block_b, 3, T), lambda b, _: (b, 0, 0)),
        ),
        compiler_params=pltpu.CompilerParams(
            dimension_semantics=("parallel",), **compiler_kwargs),
    )(lens, query, mw_t, mb, w4, bias)

    # (b_pad, 3, T) -> (B, T, 3): lane-dense inside the kernel, module layout outside.
    return jnp.transpose(out[:B], (0, 2, 1))


def intra_attention_reference(query, query_lens, params):
    """Pure-JAX reference matching the PyTorch forward exactly."""
    B, T, E = query.shape
    proj = query @ params["Mw"].T + params["Mb"]
    affinity = jnp.einsum("bte,bse->bts", proj, query)
    mask = (jnp.arange(T)[None, :] < query_lens[:, None])           # (B, T)
    masked = jnp.where(mask[:, :, None], affinity, -jnp.inf)
    w = jax.nn.softmax(masked, axis=1)
    summary = jnp.einsum("bij,bie->bje", w, query)
    cat = jnp.concatenate([summary, query], axis=-1)
    qc = jax.nn.relu(cat @ params["Wc"].T + params["bc"])
    qm = jax.nn.relu((summary * query) @ params["Wm"].T + params["bm"])
    qs = jax.nn.relu((summary - query) @ params["Ws"].T + params["bs"])
    return jnp.concatenate([qc, qm, qs], axis=-1)


if __name__ == "__main__":
    B, T, E = 4, 8, 32

    key = jax.random.PRNGKey(0)
    k_q, k_mw, k_mb, k_wc, k_wm, k_ws = jax.random.split(key, 6)

    query = jax.random.normal(k_q, (B, T, E), dtype=jnp.float32)
    query_lens = jnp.array([8, 5, 3, 1], dtype=jnp.int32)

    # Deterministic parameter init (shapes follow nn.Linear conventions).
    params = {
        "Mw": 0.1 * jax.random.normal(k_mw, (E, E), dtype=jnp.float32),
        "Mb": 0.1 * jax.random.normal(k_mb, (E,), dtype=jnp.float32),
        "Wc": 0.1 * jax.random.normal(k_wc, (1, 2 * E), dtype=jnp.float32),
        "bc": jnp.array([0.05], dtype=jnp.float32),
        "Wm": 0.1 * jax.random.normal(k_wm, (1, E), dtype=jnp.float32),
        "bm": jnp.array([0.05], dtype=jnp.float32),
        "Ws": 0.1 * jax.random.normal(k_ws, (1, E), dtype=jnp.float32),
        "bs": jnp.array([0.05], dtype=jnp.float32),
    }

    out = intra_attention_pallas(query, query_lens, params)
    out = jax.block_until_ready(out)

    ref = intra_attention_reference(query, query_lens, params)
    # Tolerance accounts for TPU's reduced-precision f32 MXU default: the kernel
    # computes the rank-1 heads exactly on the VPU and defers softmax normalization,
    # while the XLA reference routes those through (bf16-pass) matmuls, so the two
    # can differ at the ~1e-3 level even though both implement identical math.
    np.testing.assert_allclose(np.asarray(out), np.asarray(ref), rtol=1e-2, atol=1e-2)

    assert out.shape == (B, T, 3)
    print("KERNEL_OK")
</pallas_src>

<mosaic_0001>
module attributes {stable_mosaic.version = 11 : i64} {
  func.func @_intra_attention_kernel(%arg0: i32, %arg1: memref<4xi32, #tpu.memory_space<smem>>, %arg2: memref<2x8x32xf32, #tpu.memory_space<vmem>>, %arg3: memref<32x32xf32, #tpu.memory_space<vmem>>, %arg4: memref<1x32xf32, #tpu.memory_space<vmem>>, %arg5: memref<4x32xf32, #tpu.memory_space<vmem>>, %arg6: memref<1x4xf32, #tpu.memory_space<vmem>>, %arg7: memref<2x3x8xf32, #tpu.memory_space<vmem>>) attributes {dimension_semantics = [#tpu.dimension_semantics<parallel>], iteration_bounds = array<i64: 2>, scalar_prefetch = 1 : i64, scratch_operands = 0 : i64, tpu.core_type = #tpu.core_type<tc>, window_params = [{transform_indices = @transform_0, window_bounds = array<i64: 2, 8, 32>}, {pipeline_mode = #tpu.pipeline_mode<synchronous>, transform_indices = @transform_1, window_bounds = array<i64: 32, 32>}, {pipeline_mode = #tpu.pipeline_mode<synchronous>, transform_indices = @transform_2, window_bounds = array<i64: 1, 32>}, {pipeline_mode = #tpu.pipeline_mode<synchronous>, transform_indices = @transform_3, window_bounds = array<i64: 4, 32>}, {pipeline_mode = #tpu.pipeline_mode<synchronous>, transform_indices = @transform_4, window_bounds = array<i64: 1, 4>}, {transform_indices = @transform_5, window_bounds = array<i64: 2, 3, 8>}]} {
    %c2_i32 = arith.constant 2 : i32
    %0 = arith.muli %arg0, %c2_i32 : i32
    %c0 = arith.constant 0 : index
    %c0_0 = arith.constant 0 : index
    %1 = vector.load %arg3[%c0, %c0_0] : memref<32x32xf32, #tpu.memory_space<vmem>>, vector<32x32xf32>
    %c0_1 = arith.constant 0 : index
    %c0_2 = arith.constant 0 : index
    %2 = vector.load %arg4[%c0_1, %c0_2] : memref<1x32xf32, #tpu.memory_space<vmem>>, vector<1x32xf32>
    %c0_3 = arith.constant 0 : index
    %c0_4 = arith.constant 0 : index
    %3 = vector.load %arg5[%c0_3, %c0_4] : memref<4x32xf32, #tpu.memory_space<vmem>>, vector<1x32xf32>
    %c1 = arith.constant 1 : index
    %c0_5 = arith.constant 0 : index
    %4 = vector.load %arg5[%c1, %c0_5] : memref<4x32xf32, #tpu.memory_space<vmem>>, vector<1x32xf32>
    %c2 = arith.constant 2 : index
    %c0_6 = arith.constant 0 : index
    %5 = vector.load %arg5[%c2, %c0_6] : memref<4x32xf32, #tpu.memory_space<vmem>>, vector<1x32xf32>
    %c3 = arith.constant 3 : index
    %c0_7 = arith.constant 0 : index
    %6 = vector.load %arg5[%c3, %c0_7] : memref<4x32xf32, #tpu.memory_space<vmem>>, vector<1x32xf32>
    %c0_8 = arith.constant 0 : index
    %c0_9 = arith.constant 0 : index
    %7 = vector.load %arg6[%c0_8, %c0_9] : memref<1x4xf32, #tpu.memory_space<vmem>>, vector<1x1xf32>
    %c0_10 = arith.constant 0 : index
    %c1_11 = arith.constant 1 : index
    %8 = vector.load %arg6[%c0_10, %c1_11] : memref<1x4xf32, #tpu.memory_space<vmem>>, vector<1x1xf32>
    %c0_12 = arith.constant 0 : index
    %c2_13 = arith.constant 2 : index
    %9 = vector.load %arg6[%c0_12, %c2_13] : memref<1x4xf32, #tpu.memory_space<vmem>>, vector<1x1xf32>
    %c0_14 = arith.constant 0 : index
    %c0_15 = arith.constant 0 : index
    %c0_16 = arith.constant 0 : index
    %10 = vector.load %arg2[%c0_14, %c0_15, %c0_16] : memref<2x8x32xf32, #tpu.memory_space<vmem>>, vector<1x8x32xf32>
    %11 = vector.shape_cast %10 : vector<1x8x32xf32> to vector<8x32xf32>
    %cst = arith.constant dense<0.000000e+00> : vector<8x32xf32>
    %12 = tpu.matmul %11, %1, %cst {dimension_numbers = #tpu.dot_dimension_numbers<[1], [0], [0], [1], [0, 0, 1, 1], [], []>} : vector<8x32xf32>, vector<32x32xf32>, vector<8x32xf32> -> vector<8x32xf32>
    %13 = vector.broadcast %2 : vector<1x32xf32> to vector<8x32xf32>
    %14 = arith.addf %12, %13 : vector<8x32xf32>
    %cst_17 = arith.constant dense<0.000000e+00> : vector<8x8xf32>
    %15 = tpu.matmul %11, %14, %cst_17 {dimension_numbers = #tpu.dot_dimension_numbers<[1], [1], [0], [0], [0, 0, 1, 0], [], []>} : vector<8x32xf32>, vector<8x32xf32>, vector<8x8xf32> -> vector<8x8xf32>
    %16 = tpu.iota {dimensions = array<i32: 1>} : vector<8x8xi32>
    %c0_i32 = arith.constant 0 : i32
    %17 = arith.addi %0, %c0_i32 : i32
    %18 = arith.index_cast %17 : i32 to index
    %19 = memref.load %arg1[%18] : memref<4xi32, #tpu.memory_space<smem>>
    %20 = vector.broadcast %19 : i32 to vector<8x8xi32>
    %21 = arith.cmpi slt, %16, %20 : vector<8x8xi32>
    %cst_18 = arith.constant 0xFF800000 : f32
    %22 = vector.broadcast %cst_18 : f32 to vector<8x8xf32>
    %23 = arith.select %21, %15, %22 : vector<8x8xi1>, vector<8x8xf32>
    %cst_19 = arith.constant dense<0xFF800000> : vector<8xf32>
    %24 = vector.multi_reduction <maximumf>, %23, %cst_19 [1] : vector<8x8xf32> to vector<8xf32>
    %25 = vector.shape_cast %24 : vector<8xf32> to vector<8x1xf32>
    %26 = vector.broadcast %25 : vector<8x1xf32> to vector<8x8xf32>
    %27 = arith.subf %23, %26 : vector<8x8xf32>
    %28 = math.exp %27 : vector<8x8xf32>
    %cst_20 = arith.constant dense<0.000000e+00> : vector<8xf32>
    %29 = vector.multi_reduction <add>, %28, %cst_20 [1] : vector<8x8xf32> to vector<8xf32>
    %30 = vector.shape_cast %29 : vector<8xf32> to vector<8x1xf32>
    %cst_21 = arith.constant dense<0.000000e+00> : vector<8x32xf32>
    %31 = tpu.matmul %28, %11, %cst_21 {dimension_numbers = #tpu.dot_dimension_numbers<[1], [0], [0], [1], [0, 0, 1, 1], [], []>} : vector<8x8xf32>, vector<8x32xf32>, vector<8x32xf32> -> vector<8x32xf32>
    %32 = tpu.reciprocal %30 : vector<8x1xf32> -> vector<8x1xf32>
    %33 = vector.broadcast %32 : vector<8x1xf32> to vector<8x32xf32>
    %34 = arith.mulf %31, %33 : vector<8x32xf32>
    %35 = vector.broadcast %3 : vector<1x32xf32> to vector<8x32xf32>
    %36 = arith.mulf %34, %35 : vector<8x32xf32>
    %37 = vector.broadcast %4 : vector<1x32xf32> to vector<8x32xf32>
    %38 = arith.mulf %11, %37 : vector<8x32xf32>
    %39 = arith.addf %36, %38 : vector<8x32xf32>
    %cst_22 = arith.constant dense<0.000000e+00> : vector<8xf32>
    %40 = vector.multi_reduction <add>, %39, %cst_22 [1] : vector<8x32xf32> to vector<8xf32>
    %41 = vector.shape_cast %40 : vector<8xf32> to vector<1x8xf32>
    %42 = vector.broadcast %7 : vector<1x1xf32> to vector<1x8xf32>
    %43 = arith.addf %41, %42 : vector<1x8xf32>
    %cst_23 = arith.constant 0.000000e+00 : f32
    %44 = vector.broadcast %cst_23 : f32 to vector<1x8xf32>
    %45 = arith.maximumf %43, %44 : vector<1x8xf32>
    %46 = arith.mulf %34, %11 : vector<8x32xf32>
    %47 = vector.broadcast %5 : vector<1x32xf32> to vector<8x32xf32>
    %48 = arith.mulf %46, %47 : vector<8x32xf32>
    %cst_24 = arith.constant dense<0.000000e+00> : vector<8xf32>
    %49 = vector.multi_reduction <add>, %48, %cst_24 [1] : vector<8x32xf32> to vector<8xf32>
    %50 = vector.shape_cast %49 : vector<8xf32> to vector<1x8xf32>
    %51 = vector.broadcast %8 : vector<1x1xf32> to vector<1x8xf32>
    %52 = arith.addf %50, %51 : vector<1x8xf32>
    %cst_25 = arith.constant 0.000000e+00 : f32
    %53 = vector.broadcast %cst_25 : f32 to vector<1x8xf32>
    %54 = arith.maximumf %52, %53 : vector<1x8xf32>
    %55 = arith.subf %34, %11 : vector<8x32xf32>
    %56 = vector.broadcast %6 : vector<1x32xf32> to vector<8x32xf32>
    %57 = arith.mulf %55, %56 : vector<8x32xf32>
    %cst_26 = arith.constant dense<0.000000e+00> : vector<8xf32>
    %58 = vector.multi_reduction <add>, %57, %cst_26 [1] : vector<8x32xf32> to vector<8xf32>
    %59 = vector.shape_cast %58 : vector<8xf32> to vector<1x8xf32>
    %60 = vector.broadcast %9 : vector<1x1xf32> to vector<1x8xf32>
    %61 = arith.addf %59, %60 : vector<1x8xf32>
    %cst_27 = arith.constant 0.000000e+00 : f32
    %62 = vector.broadcast %cst_27 : f32 to vector<1x8xf32>
    %63 = arith.maximumf %61, %62 : vector<1x8xf32>
    %c0_28 = arith.constant 0 : index
    %c0_29 = arith.constant 0 : index
    %c0_30 = arith.constant 0 : index
    %64 = vector.load %arg7[%c0_28, %c0_29, %c0_30] : memref<2x3x8xf32, #tpu.memory_space<vmem>>, vector<1x1x8xf32>
    %65 = vector.shape_cast %64 : vector<1x1x8xf32> to vector<1x8xf32>
    %66 = vector.shape_cast %45 : vector<1x8xf32> to vector<1x1x8xf32>
    tpu.vector_store %arg7[%c0_28, %c0_29, %c0_30], %66 {strides = array<i32>} : memref<2x3x8xf32, #tpu.memory_space<vmem>>, vector<1x1x8xf32>,
    %c0_31 = arith.constant 0 : index
    %c1_32 = arith.constant 1 : index
    %c0_33 = arith.constant 0 : index
    %67 = vector.load %arg7[%c0_31, %c1_32, %c0_33] : memref<2x3x8xf32, #tpu.memory_space<vmem>>, vector<1x1x8xf32>
    %68 = vector.shape_cast %67 : vector<1x1x8xf32> to vector<1x8xf32>
    %69 = vector.shape_cast %54 : vector<1x8xf32> to vector<1x1x8xf32>
    tpu.vector_store %arg7[%c0_31, %c1_32, %c0_33], %69 {strides = array<i32>} : memref<2x3x8xf32, #tpu.memory_space<vmem>>, vector<1x1x8xf32>,
    %c0_34 = arith.constant 0 : index
    %c2_35 = arith.constant 2 : index
    %c0_36 = arith.constant 0 : index
    %70 = vector.load %arg7[%c0_34, %c2_35, %c0_36] : memref<2x3x8xf32, #tpu.memory_space<vmem>>, vector<1x1x8xf32>
    %71 = vector.shape_cast %70 : vector<1x1x8xf32> to vector<1x8xf32>
    %72 = vector.shape_cast %63 : vector<1x8xf32> to vector<1x1x8xf32>
    tpu.vector_store %arg7[%c0_34, %c2_35, %c0_36], %72 {strides = array<i32>} : memref<2x3x8xf32, #tpu.memory_space<vmem>>, vector<1x1x8xf32>,
    %c1_37 = arith.constant 1 : index
    %c0_38 = arith.constant 0 : index
    %c0_39 = arith.constant 0 : index
    %73 = vector.load %arg2[%c1_37, %c0_38, %c0_39] : memref<2x8x32xf32, #tpu.memory_space<vmem>>, vector<1x8x32xf32>
    %74 = vector.shape_cast %73 : vector<1x8x32xf32> to vector<8x32xf32>
    %cst_40 = arith.constant dense<0.000000e+00> : vector<8x32xf32>
    %75 = tpu.matmul %74, %1, %cst_40 {dimension_numbers = #tpu.dot_dimension_numbers<[1], [0], [0], [1], [0, 0, 1, 1], [], []>} : vector<8x32xf32>, vector<32x32xf32>, vector<8x32xf32> -> vector<8x32xf32>
    %76 = vector.broadcast %2 : vector<1x32xf32> to vector<8x32xf32>
    %77 = arith.addf %75, %76 : vector<8x32xf32>
    %cst_41 = arith.constant dense<0.000000e+00> : vector<8x8xf32>
    %78 = tpu.matmul %74, %77, %cst_41 {dimension_numbers = #tpu.dot_dimension_numbers<[1], [1], [0], [0], [0, 0, 1, 0], [], []>} : vector<8x32xf32>, vector<8x32xf32>, vector<8x8xf32> -> vector<8x8xf32>
    %79 = tpu.iota {dimensions = array<i32: 1>} : vector<8x8xi32>
    %c1_i32 = arith.constant 1 : i32
    %80 = arith.addi %0, %c1_i32 : i32
    %81 = arith.index_cast %80 : i32 to index
    %82 = memref.load %arg1[%81] : memref<4xi32, #tpu.memory_space<smem>>
    %83 = vector.broadcast %82 : i32 to vector<8x8xi32>
    %84 = arith.cmpi slt, %79, %83 : vector<8x8xi32>
    %cst_42 = arith.constant 0xFF800000 : f32
    %85 = vector.broadcast %cst_42 : f32 to vector<8x8xf32>
    %86 = arith.select %84, %78, %85 : vector<8x8xi1>, vector<8x8xf32>
    %cst_43 = arith.constant dense<0xFF800000> : vector<8xf32>
    %87 = vector.multi_reduction <maximumf>, %86, %cst_43 [1] : vector<8x8xf32> to vector<8xf32>
    %88 = vector.shape_cast %87 : vector<8xf32> to vector<8x1xf32>
    %89 = vector.broadcast %88 : vector<8x1xf32> to vector<8x8xf32>
    %90 = arith.subf %86, %89 : vector<8x8xf32>
    %91 = math.exp %90 : vector<8x8xf32>
    %cst_44 = arith.constant dense<0.000000e+00> : vector<8xf32>
    %92 = vector.multi_reduction <add>, %91, %cst_44 [1] : vector<8x8xf32> to vector<8xf32>
    %93 = vector.shape_cast %92 : vector<8xf32> to vector<8x1xf32>
    %cst_45 = arith.constant dense<0.000000e+00> : vector<8x32xf32>
    %94 = tpu.matmul %91, %74, %cst_45 {dimension_numbers = #tpu.dot_dimension_numbers<[1], [0], [0], [1], [0, 0, 1, 1], [], []>} : vector<8x8xf32>, vector<8x32xf32>, vector<8x32xf32> -> vector<8x32xf32>
    %95 = tpu.reciprocal %93 : vector<8x1xf32> -> vector<8x1xf32>
    %96 = vector.broadcast %95 : vector<8x1xf32> to vector<8x32xf32>
    %97 = arith.mulf %94, %96 : vector<8x32xf32>
    %98 = vector.broadcast %3 : vector<1x32xf32> to vector<8x32xf32>
    %99 = arith.mulf %97, %98 : vector<8x32xf32>
    %100 = vector.broadcast %4 : vector<1x32xf32> to vector<8x32xf32>
    %101 = arith.mulf %74, %100 : vector<8x32xf32>
    %102 = arith.addf %99, %101 : vector<8x32xf32>
    %cst_46 = arith.constant dense<0.000000e+00> : vector<8xf32>
    %103 = vector.multi_reduction <add>, %102, %cst_46 [1] : vector<8x32xf32> to vector<8xf32>
    %104 = vector.shape_cast %103 : vector<8xf32> to vector<1x8xf32>
    %105 = vector.broadcast %7 : vector<1x1xf32> to vector<1x8xf32>
    %106 = arith.addf %104, %105 : vector<1x8xf32>
    %cst_47 = arith.constant 0.000000e+00 : f32
    %107 = vector.broadcast %cst_47 : f32 to vector<1x8xf32>
    %108 = arith.maximumf %106, %107 : vector<1x8xf32>
    %109 = arith.mulf %97, %74 : vector<8x32xf32>
    %110 = vector.broadcast %5 : vector<1x32xf32> to vector<8x32xf32>
    %111 = arith.mulf %109, %110 : vector<8x32xf32>
    %cst_48 = arith.constant dense<0.000000e+00> : vector<8xf32>
    %112 = vector.multi_reduction <add>, %111, %cst_48 [1] : vector<8x32xf32> to vector<8xf32>
    %113 = vector.shape_cast %112 : vector<8xf32> to vector<1x8xf32>
    %114 = vector.broadcast %8 : vector<1x1xf32> to vector<1x8xf32>
    %115 = arith.addf %113, %114 : vector<1x8xf32>
    %cst_49 = arith.constant 0.000000e+00 : f32
    %116 = vector.broadcast %cst_49 : f32 to vector<1x8xf32>
    %117 = arith.maximumf %115, %116 : vector<1x8xf32>
    %118 = arith.subf %97, %74 : vector<8x32xf32>
    %119 = vector.broadcast %6 : vector<1x32xf32> to vector<8x32xf32>
    %120 = arith.mulf %118, %119 : vector<8x32xf32>
    %cst_50 = arith.constant dense<0.000000e+00> : vector<8xf32>
    %121 = vector.multi_reduction <add>, %120, %cst_50 [1] : vector<8x32xf32> to vector<8xf32>
    %122 = vector.shape_cast %121 : vector<8xf32> to vector<1x8xf32>
    %123 = vector.broadcast %9 : vector<1x1xf32> to vector<1x8xf32>
    %124 = arith.addf %122, %123 : vector<1x8xf32>
    %cst_51 = arith.constant 0.000000e+00 : f32
    %125 = vector.broadcast %cst_51 : f32 to vector<1x8xf32>
    %126 = arith.maximumf %124, %125 : vector<1x8xf32>
    %c1_52 = arith.constant 1 : index
    %c0_53 = arith.constant 0 : index
    %c0_54 = arith.constant 0 : index
    %127 = vector.load %arg7[%c1_52, %c0_53, %c0_54] : memref<2x3x8xf32, #tpu.memory_space<vmem>>, vector<1x1x8xf32>
    %128 = vector.shape_cast %127 : vector<1x1x8xf32> to vector<1x8xf32>
    %129 = vector.shape_cast %108 : vector<1x8xf32> to vector<1x1x8xf32>
    tpu.vector_store %arg7[%c1_52, %c0_53, %c0_54], %129 {strides = array<i32>} : memref<2x3x8xf32, #tpu.memory_space<vmem>>, vector<1x1x8xf32>,
    %c1_55 = arith.constant 1 : index
    %c1_56 = arith.constant 1 : index
    %c0_57 = arith.constant 0 : index
    %130 = vector.load %arg7[%c1_55, %c1_56, %c0_57] : memref<2x3x8xf32, #tpu.memory_space<vmem>>, vector<1x1x8xf32>
    %131 = vector.shape_cast %130 : vector<1x1x8xf32> to vector<1x8xf32>
    %132 = vector.shape_cast %117 : vector<1x8xf32> to vector<1x1x8xf32>
    tpu.vector_store %arg7[%c1_55, %c1_56, %c0_57], %132 {strides = array<i32>} : memref<2x3x8xf32, #tpu.memory_space<vmem>>, vector<1x1x8xf32>,
    %c1_58 = arith.constant 1 : index
    %c2_59 = arith.constant 2 : index
    %c0_60 = arith.constant 0 : index
    %133 = vector.load %arg7[%c1_58, %c2_59, %c0_60] : memref<2x3x8xf32, #tpu.memory_space<vmem>>, vector<1x1x8xf32>
    %134 = vector.shape_cast %133 : vector<1x1x8xf32> to vector<1x8xf32>
    %135 = vector.shape_cast %126 : vector<1x8xf32> to vector<1x1x8xf32>
    tpu.vector_store %arg7[%c1_58, %c2_59, %c0_60], %135 {strides = array<i32>} : memref<2x3x8xf32, #tpu.memory_space<vmem>>, vector<1x1x8xf32>,
    return
  }
  func.func @transform_0(%arg0: i32, %arg1: memref<4xi32, #tpu.memory_space<smem>>) -> (i32, i32, i32) {
    %c0_i32 = arith.constant 0 : i32
    %c0_i32_0 = arith.constant 0 : i32
    %c0_i32_1 = arith.constant 0 : i32
    return %arg0, %c0_i32, %c0_i32_0 : i32, i32, i32
  }
  func.func @transform_1(%arg0: i32, %arg1: memref<4xi32, #tpu.memory_space<smem>>) -> (i32, i32) {
    %c0_i32 = arith.constant 0 : i32
    %c0_i32_0 = arith.constant 0 : i32
    %c0_i32_1 = arith.constant 0 : i32
    return %c0_i32, %c0_i32_0 : i32, i32
  }
  func.func @transform_2(%arg0: i32, %arg1: memref<4xi32, #tpu.memory_space<smem>>) -> (i32, i32) {
    %c0_i32 = arith.constant 0 : i32
    %c0_i32_0 = arith.constant 0 : i32
    %c0_i32_1 = arith.constant 0 : i32
    return %c0_i32, %c0_i32_0 : i32, i32
  }
  func.func @transform_3(%arg0: i32, %arg1: memref<4xi32, #tpu.memory_space<smem>>) -> (i32, i32) {
    %c0_i32 = arith.constant 0 : i32
    %c0_i32_0 = arith.constant 0 : i32
    %c0_i32_1 = arith.constant 0 : i32
    return %c0_i32, %c0_i32_0 : i32, i32
  }
  func.func @transform_4(%arg0: i32, %arg1: memref<4xi32, #tpu.memory_space<smem>>) -> (i32, i32) {
    %c0_i32 = arith.constant 0 : i32
    %c0_i32_0 = arith.constant 0 : i32
    %c0_i32_1 = arith.constant 0 : i32
    return %c0_i32, %c0_i32_0 : i32, i32
  }
  func.func @transform_5(%arg0: i32, %arg1: memref<4xi32, #tpu.memory_space<smem>>) -> (i32, i32, i32) {
    %c0_i32 = arith.constant 0 : i32
    %c0_i32_0 = arith.constant 0 : i32
    %c0_i32_1 = arith.constant 0 : i32
    return %arg0, %c0_i32, %c0_i32_0 : i32, i32, i32
  }
}

</mosaic_0001>

<bundles_post_ra>
// kernel: tpu_custom_call.1
= control target key start
LH: loop header
LB: loop body
LE: loop exit
PB: predicated region body
PF: predicated region fallthrough
CT: control target
= control target key end

     0   :  { %s1234_s21 = smov [#allocation3]   ;;  %s1548_s0 = inlined_call_operand.hbm [shape: s32[4], index: 0, kind: input, shape index: {}]   ;;  %s1549_s1 = inlined_call_operand.hbm [shape: f32[4,8,32], index: 1, kind: input, shape index: {}]   ;;  %s1550_s2 = inlined_call_operand.hbm [shape: f32[32,32], index: 2, kind: input, shape index: {}]   ;;  %s1551_s3 = inlined_call_operand.vmem [shape: f32[1,32], index: 3, kind: input, shape index: {}]   ;;  %s1552_s4 = inlined_call_operand.vmem [shape: f32[4,32], index: 4, kind: input, shape index: {}]   ;;  %s1553_s5 = inlined_call_operand.vmem [shape: f32[1,4], index: 5, kind: input, shape index: {}]   ;;  %s1554_s6 = inlined_call_operand.vmem [shape: f32[4,3,8], index: 6, kind: output, shape index: {}]  }
   0x1   :  { %12 = dma.hbm_to_smem %s1548_s0, 16, %s1234_s21, [#allocation2] }
   0x2   :  { %1208 = dma.done.wait [#allocation2], 16 }
   0x3   :  { %1209 = vsyncadd [#allocation2], 4294967280 }
   0x4   :  { %14 = sfence }
   0x5   :  { %15 = vsyncpa [#allocation5], 0 }
   0x6   :  { %17 = vsyncpa [#allocation5 + $0x1], 0 }
   0x7   :  { %18 = vsyncpa [#allocation7], 0  ;;  %s1282_s24 = smov 0   ;;  %s1284_s25 = smov 0  }
   0x8   :  { %s1286_s26 = smov 0   ;;  %s1288_s27 = smov 0  }
   0x9 LB: > { %s966_s0 = sadd.s32 4294967295, %s1232_s27   ;;  %p44_p0 = scmp.ne.s32.totalorder %s1224_s25, %s1220_s24  ;;  %s1232_s27 = sphi %s1288_s27, %s1570_s27   ;;  %s1228_s26 = sphi %s1286_s26, %s1569_s26   ;;  %s1224_s25 = sphi %s1284_s25, %s1568_s25   ;;  %s1220_s24 = sphi %s1282_s24, %s1567_s24  }
   0xa   : > { %p1304_p1 = scmp.eq.s32.totalorder %s966_s0, 0  ;;  %p968_p2 = scmp.ge.s32.totalorder %s1232_s27, 1 }
   0xb   : > { %p165_p3 = scmp.lt.s32.totalorder %s1232_s27, 3  ;;  %s1235_s7 = smov [#allocation6]  }
   0xc   : > { %s1559_s28 = scalar_select %p1304_p1, 1, 0 }
   0xd   : > { %p1312_p4 = por %p1304_p1, %p44_p0  ;;  %p1316_p5 = pnand %p968_p2, %p165_p3 }
   0xe   : > { %s177_s8 = sshll.u32 %s1235_s7, 4  ;;  %s1329_s10 = sadd.s32 1, %s1232_s27   ;;  %s178_s8 = int_to_ptr.vmem [resolvable:$true] %s177_s8 }
   0xf   : > { %s1560_s29 = scalar_select %p1312_p4, 1, 0 }
  0x10   : > { %s1561_s30 = scalar_select %p1316_p5, 1, 0 }
  0x11   : > { %p1066_p6 = pneg %p1316_p5  ;;  %s31_s11 = sadd.s32 1, %s1228_s26 }
  0x12   : > { %s28_s12 = ssub.s32 %s1232_s27, %s1329_s10  ;;  %s1149_s13 = scalar_lea.vmem %s178_s8, 512 }
  0x13   : > { %p1324_p7 = pnand %p1066_p6, %p1304_p1  ;;  %p1150_p9 = scmp.ne.s32.totalorder %s178_s8, %s1149_s13 }
  0x14   : > { %p1157_p12 = scmp.lt.s32.totalorder %s178_s8, %s178_s8  ;;  %p1158_p13 = scmp.lt.s32.totalorder %s1149_s13, %s1149_s13 }
  0x15   : > { %p1140_p8 = pneg %p1324_p7 }
  0x16   : > { %p1159_p0 = por %p1158_p13, %p1157_p12 }
  0x17   : > { %p1152_p10 = pnand %p1150_p9, %p1140_p8 }
  0x19   : > { %p1153_p11 = pneg %p1152_p10 }
  0x1b   : > { %p1160_p2 = pnand %p1159_p0, %p1153_p11 }
  0x1d   : > { %1163 = shalt.err (!%p1160_p2)
}
  0x1e   : > { %s1236_s14 = smov 128   ;;  %s1237_s15 = smov 8  }
  0x1f   : > { %1069 = dma.hbm_to_vmem [thread:$0]  (!%p1324_p7), %s1550_s2, 512, %s178_s8, [#allocation7], %s1236_s14, %s1236_s14, %s1237_s15  }
  0x20   : > { %p29_p3 = scmp.eq.s32.totalorder %s28_s12, 0  ;;  %p38_p6 = scmp.ne.s32.totalorder %s1228_s26, %s1224_s25 }
  0x21   : > { %p39_p8 = scmp.eq.s32.totalorder %s1232_s27, 0  ;;  %p1075_p9 = scmp.lt.s32.totalorder %s1232_s27, 2 }
  0x22   : > { %s1349_s18 = scalar_select %p29_p3, %s1228_s26, %s31_s11  }
  0x23   : > { %p40_p10 = por %p39_p8, %p38_p6  ;;  %s200_s19 = sand.u32 1, %s1228_s26  }
  0x24   : > { %s971_s20 = sshll.u32 %s200_s19, 4  ;;  %s999_s21 = sshll.u32 %s1232_s27, 8 }
  0x25   : > { %s1356_s24 = scalar_lea.hbm %s1549_s1, %s999_s21  ;;  %s204_s7 = scalar_lea.vmem [#allocation4], %s971_s20 }
  0x26   : > { %s211_s8 = sshll.u32 %s204_s7, 4  ;;  %p1360_p7 = pnand %p1075_p9, %p40_p10  ;;  %s1358_s8 = int_to_ptr.vmem [resolvable:$true] %s211_s8 }
  0x27   : > { %s1364_s11 = scalar_lea.sflag [#allocation5], %s200_s19  ;;  %s1164_s12 = scalar_lea.hbm %s1356_s24, 256 }
  0x28   : > { %p1165_p11 = scmp.ne.s32.totalorder %s1356_s24, %s1164_s12  ;;  %p1166_p12 = pneg %p1360_p7 }
  0x29   : > { %s1169_s17 = scalar_lea.hbm %s1549_s1, 512  ;;  %p1170_p2 = scmp.lt.s32.totalorder %s1356_s24, %s1549_s1 }
  0x2a   : > { %p1167_p13 = pnand %p1166_p12, %p1165_p11  ;;  %p1171_p3 = scmp.lt.s32.totalorder %s1169_s17, %s1164_s12 }
  0x2c   : > { %p1168_p0 = pneg %p1167_p13  ;;  %p1172_p6 = por %p1171_p3, %p1170_p2 }
  0x2e   : > { %p1173_p8 = pnand %p1172_p6, %p1168_p0 }
  0x30   : > { %1176 = shalt.err (!%p1173_p8)
}
  0x31   : > { %s1177_s19 = scalar_lea.vmem %s1358_s8, 256  ;;  %s1238_s22 = smov [#allocation4]  }
  0x32   : > { %p1178_p9 = scmp.ne.s32.totalorder %s1358_s8, %s1177_s19  ;;  %s1182_s23 = sshll.u32 %s1238_s22, 4  ;;  %s1183_s23 = int_to_ptr.vmem [resolvable:$false] %s1182_s23 }
  0x33   : > { %s1184_s7 = scalar_lea.vmem %s1183_s23, 512  ;;  %p1185_p13 = scmp.lt.s32.totalorder %s1358_s8, %s1183_s23 }
  0x34   : > { %p1180_p10 = pnand %p1178_p9, %p1166_p12  ;;  %p1186_p1 = scmp.lt.s32.totalorder %s1184_s7, %s1177_s19 }
  0x36   : > { %p1181_p11 = pneg %p1180_p10  ;;  %p1187_p4 = por %p1186_p1, %p1185_p13 }
  0x38   : > { %p1188_p5 = pnand %p1187_p4, %p1181_p11 }
  0x3a   : > { %1191 = shalt.err (!%p1188_p5)
}
  0x3b   : > { %1073 = dma.hbm_to_vmem [thread:$0]  (!%p1360_p7), %s1356_s24, 256, %s1358_s8, %s1364_s11, %s1236_s14, %s1236_s14, %s1237_s15  }
  0x3c   : > { %p1564_p12 = scmp.ne.s32.totalorder %s1561_s30, 0 }
  0x3d   : > { %s225_s12 = sand.u32 (!%p1564_p12), 1, %s1224_s25   ;;  %p1565_p1 = scmp.ne.s32.totalorder (!%p1564_p12), %s1560_s29, 0 }
  0x3e   : > { %223 = sbr.rel (%p1564_p12) target bundleno = 1340 (0x53c), region = 40  ;;  %s1391_s13 = sshll.u32 (!%p1564_p12), %s225_s12, 4 }
  0x3f   : > { %s226_s16 = scalar_lea.sflag (!%p1564_p12), [#allocation5], %s225_s12  ;;  %s229_s17 = scalar_lea.vmem (!%p1564_p12), [#allocation4], %s1391_s13 }
  0x43   : > { %1211 = dma.done.wait (%p1565_p1), %s226_s16, 256  }
  0x44   : > { %1213 = vsyncadd (%p1565_p1), %s226_s16, 4294967040  ;;  %p1566_p4 = scmp.ne.s32.totalorder %s1559_s28, 0 }
  0x46   : > { %1215 = dma.done.wait (%p1566_p4), [#allocation7], 512  }
  0x47   : > { %1217 = vsyncadd (%p1566_p4), [#allocation7], 4294966784  ;;  %v1239_v0 = vmov 0.0   ;;  %vm1240_vm0 = vmmov 0   ;;  %v271_v1 = vld [vmem:[#allocation6 + $0x18] sm:$0xff]  ;;  %v270_v2 = vld [vmem:[#allocation6 + $0x10] sm:$0xff]  ;;  %v432_v11 = vlaneseq }
  0x48   : > { %1018 = vmatprep.subr.mxu0 %v1239_v0  ;;  %1026 = vmatprep.mubr.msk.f32.mxu0 %vm1240_vm0, %v1239_v0  ;;  %v269_v3 = vld [vmem:[#allocation6 + $0x8] sm:$0xff]  ;;  %v268_v4 = vld [vmem:[#allocation6] sm:$0xff]  ;;  %vm285_vm1 = vcmask 261120   ;;  %s1442_s30 = sshll.u32 %s966_s0, 1  ;;  %vm438_vm3 = vcmask 64512   ;;  %v1241_v26 = vmov 1  }
  0x49   : > { %1029 = vmatprep.subr.mxu1 %v1239_v0  ;;  %1031 = vmatprep.mubr.msk.f32.mxu1 %vm1240_vm0, %v1239_v0  ;;  %v1412_v5 = vld [vmem:[%s229_s17] sm:$0xff]  ;;  %v1425_v6 = vld [vmem:[%s229_s17 + $0x8] sm:$0xff]  ;;  %s434_s14 = sld [smem:[#allocation3 + %s1442_s30]]  ;;  %v1446_v12 = vand.u32 127, %v432_v11  ;;  %s756_s27 = sadd.s32 1, %s1442_s30  ;;  %v1242_v48 = vmov 0  }
  0x4a   : > { %1019 = vmatpush3.msra.mxu0 %v271_v1  ;;  %v980_v7 = vld [vmem:[%s1551_s3] ss:$0 sm:$0xff]  ;;  %1119 = vset.pattern.permute.xlu0 %v1241_v26  ;;  %s757_s0 = sld [smem:[#allocation3 + %s756_s27]]  ;;  %v1465_v29 = vld [vmem:[%s1552_s4 + $0x1] ss:$0 sm:$0xff]  ;;  %v543_v53 = vshrl.u32 %v432_v11, 7 }
  0x4b   : > { %1020 = vmatprep.subr.mxu0 %v1239_v0  ;;  %v1470_v32 = vld [vmem:[%s1552_s4] ss:$0 sm:$0xff]  ;;  %v532_v35 = vmul.f32 %v1465_v29, %v1412_v5  ;;  %v987_v43 = vld [vmem:[%s1552_s4 + $0x2] ss:$0 sm:$0xff]  ;;  %1118 = vset.pattern.permute.xlu1 %v1242_v48  ;;  %p262_p5 = scmp.lt.s32.totalorder %s1442_s30, 3  ;;  %vm592_vm5 = vcmask 57344  }
  0x4c   : > { %1021 = vmatpush3.msra.mxu0 %v270_v2  ;;  %v277_v47 = vld [vmem:[%s1553_s5] sm:$0x1]  ;;  %v1488_v55 = vsub.s32 0, %v543_v53  ;;  %v1493_v59 = vsub.s32 %v1446_v12, %v543_v53 }
  0x4d   : > { %1022 = vmatprep.subr.mxu0 %v1239_v0  ;;  %s1572_s30 = smov (!%p262_p5, %s1442_s30), 3 }
  0x4e   : > { %1023 = vmatpush3.msra.mxu0 %v269_v3  ;;  %s978_s22 = sshll.u32 %s1572_s30, 2 }
  0x4f   : > { %1024 = vmatprep.subr.mxu0 %v1239_v0  ;;  %v435_v13 = vstv %s434_s14  ;;  %s1500_s12 = scalar_lea.vmem %s1554_s6, %s978_s22 }
  0x50   : > { %1025 = vmatpush3.msra.mxu0 %v268_v4  ;;  %vm436_vm2 = vcmp.lt.s32.totalorder %v1446_v12, %v435_v13  ;;  %v758_v28 = vstv %s757_s0 }
  0x51   : > { %1027 = vmatmul.mubr.msk.f32.vlgmr.msra.gmra.mxu0 %vm285_vm1, %v1412_v5  ;;  %1039 = vmatprep.subr.mxu0 %v1239_v0  ;;  %vm759_vm4 = vcmp.lt.s32.totalorder %v1446_v12, %v758_v28 }
  0x52   : > { %1040 = vmatpush3.msra.mxu0 %v271_v1  ;;  %1047 = vmatprep.mubr.msk.f32.mxu0 %vm1240_vm0, %v1239_v0  ;;  %v988_v1 = vld [vmem:[%s1552_s4 + $0x3] ss:$0 sm:$0xff] }
  0x53   : > { %1041 = vmatprep.subr.mxu0 %v1239_v0 }
  0x54   : > { %1042 = vmatpush3.msra.mxu0 %v270_v2 }
  0x55   : > { %1043 = vmatprep.subr.mxu0 %v1239_v0 }
  0x56   : > { %1044 = vmatpush3.msra.mxu0 %v269_v3 }
  0x57   : > { %1045 = vmatprep.subr.mxu0 %v1239_v0 }
  0x58   : > { %1046 = vmatpush3.msra.mxu0 %v268_v4  ;;  %v1243_v4 = vmov 2  }
  0x59   : > { %1048 = vmatmul.mubr.msk.f32.vlgmr.msra.gmra.mxu0 %vm285_vm1, %v1425_v6 }
 0x111   : > { %v355_v8 = vpop.f32.mrf.mxu0 }
 0x112   : > { %v356_v9 = vadd.f32 %v980_v7, %v355_v8 }
 0x113   : > { %v1028_v10 = vpop.f32.mrf.mxu0 }
 0x114   : > { %1030 = vmatpush3.xpose.msk.msra.mxu1 %vm285_vm1, %v356_v9 }
 0x115   : > { %1034 = vmatprep.subr.mxu1 %v1239_v0 }
 0x117   : > { %1032 = vmatmul.mubr.msk.f32.vlgmr.msra.gmra.mxu1 %vm285_vm1, %v1412_v5 }
 0x118   : > { %1035 = vmatpush3.msra.mxu1 %v1412_v5  ;;  %1036 = vmatprep.mubr.msk.f32.mxu1 %vm1240_vm0, %v1239_v0 }
 0x119   : > { %1050 = vmatprep.subr.mxu1 %v1239_v0  ;;  %v679_v18 = vpop.f32.mrf.mxu0 }
 0x11a   : > { %v680_v23 = vadd.f32 %v980_v7, %v679_v18 }
 0x11b   : > { %v1049_v19 = vpop.f32.mrf.mxu0 }
 0x1d7   : > { %v428_v14 = vpop.f32.mrf.mxu1 }
 0x1d8   : > { %v437_v15 = vsel %vm436_vm2, %v428_v14, -inf }
 0x1d9   : > { %v1033_v16 = vpop.f32.mrf.mxu1  ;;  %v439_v17 = vsel %vm438_vm3, %v437_v15, -inf }
 0x1da   : > { %440 = vmax.xlane.f32.xlu0 %v439_v17 }
 0x263   : > { %v441_v20 = vpop.xlane.xlu0 %440 }
 0x264   : > { %v442_v21 = vsub.f32 %v437_v15, %v441_v20  ;;  %v846_v15 = vmul.f32 %v1425_v6, %v1465_v29 }
 0x266   : > { %v443_v22 = vmul.f32 1.442695, %v442_v21 }
 0x268   : > { %1122 = vpow2.f32 %v443_v22 }
 0x275   : > { %v1123_v24 = vpop.eup %1122 }
 0x276   : > { %1037 = vmatmul.mubr.msk.f32.vlgmr.msra.gmra.mxu1 %vm438_vm3, %v1123_v24  ;;  %v445_v25 = vsel %vm438_vm3, %v1123_v24, 0.0 }
 0x277   : > { %1051 = vmatpush3.xpose.msk.msra.mxu1 %vm285_vm1, %v680_v23  ;;  %446 = vadd.xlane.f32.xlu1 %v445_v25 }
 0x278   : > { %1052 = vmatprep.mubr.msk.f32.mxu1 %vm1240_vm0, %v1239_v0  ;;  %1055 = vmatprep.subr.mxu1 %v1239_v0 }
 0x27a   : > { %1053 = vmatmul.mubr.msk.f32.vlgmr.msra.gmra.mxu1 %vm285_vm1, %v1425_v6 }
 0x27b   : > { %1056 = vmatpush3.msra.mxu1 %v1425_v6  ;;  %1057 = vmatprep.mubr.msk.f32.mxu1 %vm1240_vm0, %v1239_v0 }
 0x300   : > { %v447_v27 = vpop.xlane.xlu1 %446 }
 0x301   : > { %1124 = vrcp.f32 %v447_v27 }
 0x30e   : > { %v1125_v30 = vpop.eup %1124 }
 0x336   : > { %v517_v31 = vpop.f32.mrf.mxu1 }
 0x337   : > { %v522_v33 = vmul.f32 %v1125_v30, %v517_v31 }
 0x338   : > { %v1038_v34 = vpop.f32.mrf.mxu1 }
 0x339   : > { %v527_v36 = vmul.f32 %v1470_v32, %v522_v33  ;;  %v548_v42 = vmul.f32 %v522_v33, %v1412_v5  ;;  %v567_v0 = vsub.f32 %v522_v33, %v1412_v5 }
 0x33a   : > { %v752_v37 = vpop.f32.mrf.mxu1 }
 0x33b   : > { %v760_v38 = vsel %vm759_vm4, %v752_v37, -inf  ;;  %v533_v41 = vadd.f32 %v532_v35, %v527_v36  ;;  %v553_v45 = vmul.f32 %v987_v43, %v548_v42  ;;  %v572_v2 = vmul.f32 %v988_v1, %v567_v0 }
 0x33c   : > { %v1054_v39 = vpop.f32.mrf.mxu1  ;;  %v761_v40 = vsel %vm438_vm3, %v760_v38, -inf }
 0x33d   : > { %762 = vmax.xlane.f32.xlu0 %v761_v40  ;;  %v534_v44 = vsel %vm285_vm1, %v533_v41, 0.0  ;;  %v554_v46 = vsel %vm285_vm1, %v553_v45, 0.0  ;;  %v573_v3 = vsel %vm285_vm1, %v572_v2, 0.0 }
 0x341   : > { %535 = vadd.xlane.f32.xlu0 %v534_v44 }
 0x345   : > { %555 = vadd.xlane.f32.xlu0 %v554_v46 }
 0x35b   : > { %558 = vperm.xlu0 %1119, %v277_v47  }
 0x35f   : > { %1121 = vset.pattern.permute.xlu0 %v1243_v4 }
 0x3c6   : > { %v763_v49 = vpop.xlane.xlu0 %762 }
 0x3c7   : > { %v764_v50 = vsub.f32 %v760_v38, %v763_v49 }
 0x3c9   : > { %v765_v51 = vmul.f32 1.442695, %v764_v50 }
 0x3ca   : > { %v536_v52 = vpop.xlane.xlu0 %535 }
 0x3cb   : > { %1126 = vpow2.f32 %v765_v51 }
 0x3ce   : > { %v556_v54 = vpop.xlane.xlu0 %555 }
 0x3d6   : > { %v559_v56 = vpop.permute.xlu0 %558 }
 0x3d7   : > { %v564_v57 = vrot.slane %v559_v56, %v1488_v55 }
 0x3d8   : > { %v1127_v58 = vpop.eup %1126 }
 0x3d9   : > { %v565_v60 = vadd.f32 %v564_v57, %v556_v54  ;;  %1058 = vmatmul.mubr.msk.f32.vlgmr.msra.gmra.mxu1 %vm438_vm3, %v1127_v58  ;;  %v767_v61 = vsel %vm438_vm3, %v1127_v58, 0.0 }
 0x3da   : > { %768 = vadd.xlane.f32.xlu1 %v767_v61 }
 0x3db   : > { %v566_v62 = vmax.f32 %v565_v60, 0.0 }
 0x3dd   : > { %v598_v63 = vrot.slane %v566_v62, %v1493_v59 }
 0x3df   : > { %600 = vst.msk [vmem:[%s1500_s12 + $0x1] sm:$0x1] %vm592_vm5, %v598_v63 }
 0x3eb   : > { %539 = vperm.xlu1 %1118, %v277_v47  }
 0x3ef   : > { %1120 = vset.pattern.permute.xlu1 %v1243_v4 }
 0x40f   : > { %574 = vadd.xlane.f32.xlu1 %v573_v3 }
 0x463   : > { %v769_v7 = vpop.xlane.xlu1 %768 }
 0x464   : > { %1128 = vrcp.f32 %v769_v7 }
 0x467   : > { %v540_v8 = vpop.permute.xlu1 %539 }
 0x468   : > { %v545_v9 = vrot.slane %v540_v8, %v1488_v55 }
 0x46a   : > { %v546_v10 = vadd.f32 %v545_v9, %v536_v52 }
 0x46c   : > { %v547_v11 = vmax.f32 %v546_v10, 0.0 }
 0x46e   : > { %v590_v12 = vrot.slane %v547_v11, %v1493_v59 }
 0x470   : > { %593 = vst.msk [vmem:[%s1500_s12] sm:$0x1] %vm592_vm5, %v590_v12 }
 0x471   : > { %v1129_v5 = vpop.eup %1128 }
 0x498   : > { %v575_v26 = vpop.xlane.xlu1 %574 }
 0x499   : > { %v839_v13 = vpop.f32.mrf.mxu1 }
 0x49a   : > { %v844_v14 = vmul.f32 %v1129_v5, %v839_v13 }
 0x49b   : > { %v1059_v16 = vpop.f32.mrf.mxu1 }
 0x49c   : > { %v853_v17 = vmul.f32 %v1425_v6, %v844_v14  ;;  %v845_v18 = vmul.f32 %v1470_v32, %v844_v14  ;;  %v860_v19 = vsub.f32 %v844_v14, %v1425_v6 }
 0x49e   : > { %v854_v20 = vmul.f32 %v987_v43, %v853_v17  ;;  %v847_v21 = vadd.f32 %v846_v15, %v845_v18  ;;  %v861_v24 = vmul.f32 %v988_v1, %v860_v19 }
 0x4a0   : > { %v855_v22 = vsel %vm285_vm1, %v854_v20, 0.0  ;;  %v848_v23 = vsel %vm285_vm1, %v847_v21, 0.0  ;;  %v862_v25 = vsel %vm285_vm1, %v861_v24, 0.0 }
 0x4a1   : > { %856 = vadd.xlane.f32.xlu1 %v855_v22  ;;  %849 = vadd.xlane.f32.xlu0 %v848_v23 }
 0x4a5   : > { %863 = vadd.xlane.f32.xlu1 %v862_v25 }
 0x4b6   : > { %577 = vperm.xlu1 %1120, %v277_v47  }
 0x52a   : > { %v857_v27 = vpop.xlane.xlu1 %856  ;;  %v850_v28 = vpop.xlane.xlu0 %849 }
 0x52b   : > { %v858_v29 = vadd.f32 %v857_v27, %v564_v57  ;;  %v851_v6 = vadd.f32 %v850_v28, %v545_v9 }
 0x52d   : > { %v859_v30 = vmax.f32 %v858_v29, 0.0  ;;  %v852_v31 = vmax.f32 %v851_v6, 0.0 }
 0x52e   : > { %v864_v32 = vpop.xlane.xlu1 %863 }
 0x52f   : > { %v879_v33 = vrot.slane %v859_v30, %v1493_v59  ;;  %v871_v34 = vrot.slane %v852_v31, %v1493_v59 }
 0x531   : > { %995 = vst.msk [vmem:[%s1500_s12 + $0x5] sm:$0x1] %vm592_vm5, %v879_v33  ;;  %994 = vst.msk [vmem:[%s1500_s12 + $0x4] sm:$0x1] %vm592_vm5, %v871_v34 }
 0x532   : > { %v578_v35 = vpop.permute.xlu1 %577 }
 0x533   : > { %v583_v36 = vrot.slane %v578_v35, %v1488_v55 }
 0x535   : > { %v584_v37 = vadd.f32 %v583_v36, %v575_v26  ;;  %v865_v38 = vadd.f32 %v864_v32, %v583_v36 }
 0x537   : > { %v585_v39 = vmax.f32 %v584_v37, 0.0  ;;  %v866_v40 = vmax.f32 %v865_v38, 0.0 }
 0x539   : > { %v605_v41 = vrot.slane %v585_v39, %v1493_v59  ;;  %v886_v42 = vrot.slane %v866_v40, %v1493_v59 }
 0x53b   : > { %607 = vst.msk [vmem:[%s1500_s12 + $0x2] sm:$0x1] %vm592_vm5, %v605_v41  ;;  %996 = vst.msk [vmem:[%s1500_s12 + $0x6] sm:$0x1] %vm592_vm5, %v886_v42 }
 0x53c PF: > { %p21_p7 = scmp.ge.s32.totalorder %s1329_s10, 4   ;;  %s1567_s24 = smov %s1224_s25 }
 0x53d   : > { %s1568_s25 = smov %s1228_s26  ;;  %s1569_s26 = smov %s1349_s18 }
 0x53e   : > { %s1570_s27 = smov %s1329_s10  ;;  %23 = sbr.rel (!%p21_p7) target bundleno = 9 (0x9), region = 86 }
 0x543   :  { %911 = vsyncpa [#allocation5], 1 }
 0x544   :  { %913 = vsyncpa [#allocation5 + $0x1], 1 }
 0x545   :  { %914 = vsyncpa [#allocation7], 1 }

</bundles_post_ra>
